<compile_context>
chip_gen: v5e
topology: v5e:2x2
jax: 0.10.0
libtpu: 0.0.40
codegen_flags: <defaults>
</compile_context>

<pallas_src>
import math

import jax
import jax.numpy as jnp
from jax.experimental import pallas as pl
from jax.experimental.pallas import tpu as pltpu


# ----------------------------------------------------------------------------
# Pallas kernel: out = y + x   (the residual add — the hot path of Residual)
# ----------------------------------------------------------------------------
def _residual_add_kernel(y_ref, x_ref, o_ref):
    o_ref[...] = y_ref[...] + x_ref[...]


_TARGET_BLOCK_BYTES = 2 * 1024 * 1024    # ~2 MiB per operand per block
_VMEM_LIMIT_BYTES = 32 * 1024 * 1024     # safe on v5e / v6e / v7x
_LANE = 128


def _sublane_multiple(dtype):
    # minimum second-to-last tile dim by element width
    return {4: 8, 2: 16, 1: 32}.get(jnp.dtype(dtype).itemsize, 8)


def residual_add(y, x):
    """out = y + x, computed with a lane-dense, large-block Pallas TPU kernel."""
    assert y.shape == x.shape, (y.shape, x.shape)
    assert y.dtype == x.dtype, (y.dtype, x.dtype)
    orig_shape = x.shape
    dtype = x.dtype
    itemsize = jnp.dtype(dtype).itemsize
    total = math.prod(orig_shape) if orig_shape else 1

    # --- flatten and re-tile into a lane-dense 2D view ----------------------
    yf = y.reshape(total)
    xf = x.reshape(total)
    pad = (-total) % _LANE
    if pad:
        yf = jnp.pad(yf, (0, pad))
        xf = jnp.pad(xf, (0, pad))
    padded = total + pad

    lane = _LANE
    for cand in (4096, 2048, 1024, 512, 256):
        if padded % cand == 0:
            lane = cand
            break
    rows = padded // lane

    y2 = yf.reshape(rows, lane)
    x2 = xf.reshape(rows, lane)

    # --- block sizing: ~2 MiB per operand, dtype-aware sublane multiple -----
    sub = _sublane_multiple(dtype)
    tm = max(sub, (_TARGET_BLOCK_BYTES // (lane * itemsize)) // sub * sub)
    if rows <= sub:
        tm = rows                                    # full-dim block (allowed)
    else:
        tm = min(tm, ((rows + sub - 1) // sub) * sub)  # don't over-allocate VMEM
    grid_m = pl.cdiv(rows, tm)

    out2 = pl.pallas_call(
        _residual_add_kernel,
        out_shape=jax.ShapeDtypeStruct((rows, lane), dtype),
        grid_spec=pltpu.PrefetchScalarGridSpec(
            num_scalar_prefetch=0,
            grid=(grid_m,),
            in_specs=[
                pl.BlockSpec((tm, lane), lambda i: (i, 0)),
                pl.BlockSpec((tm, lane), lambda i: (i, 0)),
            ],
            out_specs=pl.BlockSpec((tm, lane), lambda i: (i, 0)),
        ),
        input_output_aliases={0: 0},                  # output reuses y's buffer
        compiler_params=pltpu.CompilerParams(
            dimension_semantics=("parallel",),
            vmem_limit_bytes=_VMEM_LIMIT_BYTES,
        ),
    )(y2, x2)

    out = out2.reshape(padded)
    if pad:
        out = out[:total]
    return out.reshape(orig_shape)


# ----------------------------------------------------------------------------
# Residual wrapper — mirrors the PyTorch nn.Module
# ----------------------------------------------------------------------------
class Residual:
    """forward(x, *args, **kwargs) = fn(x, *args, **kwargs) + x."""

    def __init__(self, fn):
        # TODO(synk): `fn` is an arbitrary sub-module in the reference code; it
        # runs as plain JAX here, only the residual add runs in Pallas.
        self.fn = fn

    def __call__(self, x, *args, **kwargs):
        y = self.fn(x, *args, **kwargs)
        return residual_add(y, x)


# ----------------------------------------------------------------------------
# Demo: wrap a deterministic 1x1 conv (a typical `fn` inside the U-Net) and run.
# ----------------------------------------------------------------------------
def make_pointwise_conv(key, channels, dtype=jnp.float32):
    kw, kb = jax.random.split(key)
    weight = jax.random.normal(kw, (channels, channels), dtype) * 0.1
    bias = jax.random.normal(kb, (channels,), dtype) * 0.1

    def fn(x):  # x: (N, C, H, W)  ->  (N, C, H, W)
        y = jnp.einsum("nchw,dc->ndhw", x, weight)
        return y + bias[None, :, None, None]

    return fn


if __name__ == "__main__":
    key = jax.random.PRNGKey(0)
    k_x, k_p, k_x2 = jax.random.split(key, 3)

    # Main demo shape (lane-dense path, single block).
    N, C, H, W = 2, 4, 16, 16
    x = jax.random.normal(k_x, (N, C, H, W), jnp.float32)

    fn = make_pointwise_conv(k_p, C)
    residual = Residual(fn)

    out = residual(x)
    out = jax.block_until_ready(out)

    ref = fn(x) + x
    assert out.shape == (N, C, H, W)
    assert out.dtype == x.dtype
    assert bool(jnp.allclose(out, ref, atol=1e-5, rtol=1e-5))

    # Padding path: spatial size (7x7) not a multiple of 128.
    x2 = jax.random.normal(k_x2, (2, 4, 7, 7), jnp.float32)
    out2 = jax.block_until_ready(residual_add(fn(x2), x2))
    assert bool(jnp.allclose(out2, fn(x2) + x2, atol=1e-5, rtol=1e-5))

    print("KERNEL_OK")
</pallas_src>

<mosaic_0001>
module attributes {stable_mosaic.version = 11 : i64} {
  func.func @_residual_add_kernel(%arg0: i32, %arg1: memref<1x2048xf32, #tpu.memory_space<vmem>>, %arg2: memref<1x2048xf32, #tpu.memory_space<vmem>>, %arg3: memref<1x2048xf32, #tpu.memory_space<vmem>>) attributes {dimension_semantics = [#tpu.dimension_semantics<parallel>], iteration_bounds = array<i64: 1>, scalar_prefetch = 0 : i64, scratch_operands = 0 : i64, tpu.core_type = #tpu.core_type<tc>, window_params = [{transform_indices = @transform_0, window_bounds = array<i64: 1, 2048>}, {transform_indices = @transform_1, window_bounds = array<i64: 1, 2048>}, {transform_indices = @transform_2, window_bounds = array<i64: 1, 2048>}]} {
    %c0 = arith.constant 0 : index
    %c0_0 = arith.constant 0 : index
    %0 = vector.load %arg1[%c0, %c0_0] : memref<1x2048xf32, #tpu.memory_space<vmem>>, vector<1x2048xf32>
    %c0_1 = arith.constant 0 : index
    %c0_2 = arith.constant 0 : index
    %1 = vector.load %arg2[%c0_1, %c0_2] : memref<1x2048xf32, #tpu.memory_space<vmem>>, vector<1x2048xf32>
    %2 = arith.addf %0, %1 : vector<1x2048xf32>
    %c0_3 = arith.constant 0 : index
    %c0_4 = arith.constant 0 : index
    %3 = vector.load %arg3[%c0_3, %c0_4] : memref<1x2048xf32, #tpu.memory_space<vmem>>, vector<1x2048xf32>
    tpu.vector_store %arg3[%c0_3, %c0_4], %2 {strides = array<i32>} : memref<1x2048xf32, #tpu.memory_space<vmem>>, vector<1x2048xf32>,
    return
  }
  func.func @transform_0(%arg0: i32) -> (i32, i32) {
    %c0_i32 = arith.constant 0 : i32
    %c0_i32_0 = arith.constant 0 : i32
    return %arg0, %c0_i32 : i32, i32
  }
  func.func @transform_1(%arg0: i32) -> (i32, i32) {
    %c0_i32 = arith.constant 0 : i32
    %c0_i32_0 = arith.constant 0 : i32
    return %arg0, %c0_i32 : i32, i32
  }
  func.func @transform_2(%arg0: i32) -> (i32, i32) {
    %c0_i32 = arith.constant 0 : i32
    %c0_i32_0 = arith.constant 0 : i32
    return %arg0, %c0_i32 : i32, i32
  }
}

</mosaic_0001>

<bundles_post_ra>
// kernel: tpu_custom_call.1
= control target key start
LH: loop header
LB: loop body
LE: loop exit
PB: predicated region body
PF: predicated region fallthrough
CT: control target
= control target key end

     0   :  { %7 = vsyncpa [#allocation3], 0  ;;  %s134_s0 = inlined_call_operand.hbm [shape: f32[1,2048], index: 0, kind: input, shape index: {}, may-alias: {0,2}]   ;;  %s135_s1 = inlined_call_operand.vmem [shape: f32[1,2048], index: 1, kind: input, shape index: {}]   ;;  %s136_s2 = inlined_call_operand.hbm [shape: f32[1,2048], index: 2, kind: output, shape index: {}, may-alias: {0,2}]  }
   0x1   :  { %8 = vsyncpa [#allocation4], 0  ;;  %s14_s11 = sshll.u32 %s134_s0, 4  ;;  %s105_s12 = smov [#allocation2]   ;;  %s15_s11 = int_to_ptr.hbm [resolvable:$true] %s14_s11 }
   0x2   :  { %s16_s13 = sshll.u32 %s105_s12, 4  ;;  %s17_s13 = int_to_ptr.vmem [resolvable:$true] %s16_s13 }
   0x3   :  { %19 = dma.hbm_to_vmem [thread:$0]  %s15_s11, 256, %s17_s13, [#allocation3]  }
   0x4   :  { %101 = dma.done.wait [#allocation3], 256  }
   0x5   :  { %102 = vsyncadd [#allocation3], 4294967040  ;;  %s106_s14 = smov [#allocation5]   ;;  %s41_s18 = sshll.u32 %s136_s2, 4  ;;  %v26_v0 = vld [vmem:[#allocation2] sm:$0xff]  ;;  %v27_v2 = vld [vmem:[#allocation2 + $0x8] sm:$0xff]  ;;  %s42_s18 = int_to_ptr.hbm [resolvable:$true] %s41_s18 }
   0x6   :  { %s39_s15 = sshll.u32 %s106_s14, 4  ;;  %v28_v1 = vld [vmem:[%s135_s1] sm:$0xff]  ;;  %v29_v4 = vld [vmem:[%s135_s1 + $0x8] sm:$0xff]  ;;  %s40_s15 = int_to_ptr.vmem [resolvable:$true] %s39_s15 }
   0x7   :  { %v30_v3 = vadd.f32 %v28_v1, %v26_v0  ;;  %v31_v5 = vadd.f32 %v29_v4, %v27_v2 }
   0x9   :  { %32 = vst [vmem:[#allocation5] sm:$0xff] %v30_v3 }
   0xa   :  { %33 = vst [vmem:[#allocation5 + $0x8] sm:$0xff] %v31_v5 }
   0xb   :  { %44 = dma.vmem_to_hbm [thread:$0]  %s40_s15, 256, %s42_s18, [#allocation4]  }
   0xc   :  { %103 = dma.done.wait [#allocation4], 256  }
   0xd   :  { %104 = vsyncadd [#allocation4], 4294967040 }
   0xe   :  { %49 = vsyncpa [#allocation3], 1 }
   0xf   :  { %50 = vsyncpa [#allocation4], 1 }

</bundles_post_ra>
